<compile_context>
chip_gen: v7x
topology: tpu7x:2x2x1
jax: 0.10.0
libtpu: 0.0.40
codegen_flags: <defaults>
</compile_context>

<pallas_src>
import jax
import jax.numpy as jnp
from jax.experimental import pallas as pl
from jax.experimental.pallas import tpu as pltpu


def _make_ese_kernel(true_hw):
    """Build the kernel as a closure over the true (unpadded) spatial size."""
    inv_hw = 1.0 / float(true_hw)

    def kernel(x_ref, wt_ref, b_ref, o_ref):
        # x_ref: (Bn, C, HWp)   wt_ref: (C, C) == W^T   b_ref: (1, C)
        # o_ref: (Bn, C, HWp)
        x = x_ref[...]                                    # native dtype, no upcast

        # --- global average pool (padded lanes are zero, divide by true HW) ---
        avg = jnp.sum(x, axis=-1, dtype=jnp.float32) * jnp.float32(inv_hw)  # (Bn, C)

        # --- 1x1 conv: y = avg @ W^T + b  (weight already transposed in wrapper) ---
        y = jnp.dot(avg, wt_ref[...], preferred_element_type=jnp.float32)
        y = y + b_ref[...].astype(jnp.float32)            # (Bn, C)

        # --- Hsigmoid: relu6(y + 3) / 6 ---
        gate = jnp.clip(y + 3.0, 0.0, 6.0) / 6.0          # (Bn, C), f32

        # --- scale input in its native dtype ---
        o_ref[...] = x * gate.astype(x.dtype)[:, :, None]

    return kernel


def ese_module(x_nchw, weight, bias, *, target_block_bytes=2 * 1024 * 1024):
    """x_nchw: (N, C, H, W); weight: (C, C, 1, 1); bias: (C,)."""
    N, C, H, W = x_nchw.shape
    HW = H * W
    HWp = ((HW + 127) // 128) * 128                       # lane-dense last dim

    x = x_nchw.reshape(N, C, HW)
    if HWp != HW:
        x = jnp.pad(x, ((0, 0), (0, 0), (0, HWp - HW)))   # zero pad: sum unaffected

    wT = jnp.transpose(weight.reshape(C, C))              # hoisted transpose (once)
    b2d = bias.reshape(1, C).astype(jnp.float32)

    # --- choose samples-per-block Bn: divisor of N, block ~target bytes,
    #     prefer grid >= 2 so v7x can split across its two TensorCores ---
    itemsize = x.dtype.itemsize
    per_sample = C * HWp * itemsize
    budget_bn = max(1, target_block_bytes // per_sample)
    divisors = [d for d in range(1, N + 1) if N % d == 0]
    fitting = [d for d in divisors if d <= budget_bn] or [1]
    pref = [d for d in fitting if N // d >= 2]
    Bn = max(pref) if pref else max(fitting)
    grid = N // Bn

    # TODO(synk): for very large feature maps where a single (1, C, HWp) slab
    # exceeds VMEM, fall back to a two-phase HW-tiled reduce + scale structure.

    block_bytes = Bn * per_sample
    # in + out, double-buffered, plus resident weight/bias and headroom.
    vmem_needed = 4 * block_bytes + 2 * (C * C * wT.dtype.itemsize) + (4 << 20)
    vmem_limit = int(min(max(vmem_needed, 32 << 20), 48 << 20))  # safe on v5e/v6e/v7x

    cost = pl.CostEstimate(
        flops=2 * N * C * C + 3 * N * C * HWp,
        transcendentals=0,
        bytes_accessed=2 * N * C * HWp * itemsize + C * C * wT.dtype.itemsize,
    )

    out = pl.pallas_call(
        _make_ese_kernel(HW),
        out_shape=jax.ShapeDtypeStruct((N, C, HWp), x.dtype),
        grid_spec=pltpu.PrefetchScalarGridSpec(
            num_scalar_prefetch=0,
            grid=(grid,),
            in_specs=[
                pl.BlockSpec((Bn, C, HWp), lambda n: (n, 0, 0)),
                pl.BlockSpec((C, C), lambda n: (0, 0)),
                pl.BlockSpec((1, C), lambda n: (0, 0)),
            ],
            out_specs=pl.BlockSpec((Bn, C, HWp), lambda n: (n, 0, 0)),
        ),
        compiler_params=pltpu.CompilerParams(
            dimension_semantics=("parallel",),
            vmem_limit_bytes=vmem_limit,
        ),
        input_output_aliases={0: 0},
        cost_estimate=cost,
    )(x, wT, b2d)

    if HWp != HW:
        out = out[:, :, :HW]
    return out.reshape(N, C, H, W)


def ese_reference(x_nchw, weight, bias):
    """Pure-JAX reference matching the PyTorch forward exactly."""
    avg = jnp.mean(x_nchw.astype(jnp.float32), axis=(2, 3))   # (N, C)
    w2d = weight.reshape(weight.shape[0], weight.shape[1])    # (C, C)
    y = avg @ w2d.T.astype(jnp.float32) + bias[None, :].astype(jnp.float32)
    gate = jnp.clip(y + 3.0, 0.0, 6.0) / 6.0                  # (N, C)
    return x_nchw * gate.astype(x_nchw.dtype)[:, :, None, None]


if __name__ == "__main__":
    key = jax.random.PRNGKey(0)
    kx, kw, kb = jax.random.split(key, 3)

    N, C, H, W = 2, 4, 16, 16
    x = jax.random.normal(kx, (N, C, H, W), dtype=jnp.float32)

    # Conv2d(channel, channel, kernel_size=1) style init: weight (C,C,1,1), bias (C,)
    fan_in = C * 1 * 1
    bound = 1.0 / (fan_in ** 0.5)
    weight = jax.random.uniform(kw, (C, C, 1, 1), minval=-bound, maxval=bound,
                                dtype=jnp.float32)
    bias = jax.random.uniform(kb, (C,), minval=-bound, maxval=bound,
                              dtype=jnp.float32)

    # Compute the reference first (defensive ordering w.r.t. output aliasing).
    ref = jax.block_until_ready(ese_reference(x, weight, bias))

    out = ese_module(x, weight, bias)
    out = jax.block_until_ready(out)

    assert out.shape == (N, C, H, W)
    assert jnp.allclose(out, ref, atol=1e-5, rtol=1e-5), "mismatch vs reference"

    print("KERNEL_OK")
</pallas_src>

<mosaic_0001>
module attributes {stable_mosaic.version = 11 : i64} {
  func.func @kernel(%arg0: i32, %arg1: memref<1x4x256xf32, #tpu.memory_space<vmem>>, %arg2: memref<4x4xf32, #tpu.memory_space<vmem>>, %arg3: memref<1x4xf32, #tpu.memory_space<vmem>>, %arg4: memref<1x4x256xf32, #tpu.memory_space<vmem>>) attributes {dimension_semantics = [#tpu.dimension_semantics<parallel>], iteration_bounds = array<i64: 2>, scalar_prefetch = 0 : i64, scratch_operands = 0 : i64, tpu.core_type = #tpu.core_type<tc>, window_params = [{transform_indices = @transform_0, window_bounds = array<i64: 1, 4, 256>}, {pipeline_mode = #tpu.pipeline_mode<synchronous>, transform_indices = @transform_1, window_bounds = array<i64: 4, 4>}, {pipeline_mode = #tpu.pipeline_mode<synchronous>, transform_indices = @transform_2, window_bounds = array<i64: 1, 4>}, {transform_indices = @transform_3, window_bounds = array<i64: 1, 4, 256>}]} {
    %c0 = arith.constant 0 : index
    %c0_0 = arith.constant 0 : index
    %c0_1 = arith.constant 0 : index
    %0 = vector.load %arg1[%c0, %c0_0, %c0_1] : memref<1x4x256xf32, #tpu.memory_space<vmem>>, vector<1x4x256xf32>
    %cst = arith.constant dense<0.000000e+00> : vector<1x4xf32>
    %1 = vector.multi_reduction <add>, %0, %cst [2] : vector<1x4x256xf32> to vector<1x4xf32>
    %cst_2 = arith.constant 3.906250e-03 : f32
    %2 = vector.broadcast %cst_2 : f32 to vector<1x4xf32>
    %3 = arith.mulf %1, %2 : vector<1x4xf32>
    %c0_3 = arith.constant 0 : index
    %c0_4 = arith.constant 0 : index
    %4 = vector.load %arg2[%c0_3, %c0_4] : memref<4x4xf32, #tpu.memory_space<vmem>>, vector<4x4xf32>
    %cst_5 = arith.constant dense<0.000000e+00> : vector<1x4xf32>
    %5 = tpu.matmul %3, %4, %cst_5 {dimension_numbers = #tpu.dot_dimension_numbers<[1], [0], [0], [1], [0, 0, 1, 1], [], []>} : vector<1x4xf32>, vector<4x4xf32>, vector<1x4xf32> -> vector<1x4xf32>
    %c0_6 = arith.constant 0 : index
    %c0_7 = arith.constant 0 : index
    %6 = vector.load %arg3[%c0_6, %c0_7] : memref<1x4xf32, #tpu.memory_space<vmem>>, vector<1x4xf32>
    %7 = arith.addf %5, %6 : vector<1x4xf32>
    %cst_8 = arith.constant 3.000000e+00 : f32
    %8 = vector.broadcast %cst_8 : f32 to vector<1x4xf32>
    %9 = arith.addf %7, %8 : vector<1x4xf32>
    %cst_9 = arith.constant 0.000000e+00 : f32
    %cst_10 = arith.constant 6.000000e+00 : f32
    %10 = vector.broadcast %cst_9 : f32 to vector<1x4xf32>
    %11 = arith.maximumf %10, %9 : vector<1x4xf32>
    %12 = vector.broadcast %cst_10 : f32 to vector<1x4xf32>
    %13 = arith.minimumf %12, %11 : vector<1x4xf32>
    %cst_11 = arith.constant 6.000000e+00 : f32
    %14 = vector.broadcast %cst_11 : f32 to vector<1x4xf32>
    %15 = arith.divf %13, %14 : vector<1x4xf32>
    %16 = vector.shape_cast %15 : vector<1x4xf32> to vector<1x4x1xf32>
    %17 = vector.broadcast %16 : vector<1x4x1xf32> to vector<1x4x256xf32>
    %18 = arith.mulf %0, %17 : vector<1x4x256xf32>
    %c0_12 = arith.constant 0 : index
    %c0_13 = arith.constant 0 : index
    %c0_14 = arith.constant 0 : index
    %19 = vector.load %arg4[%c0_12, %c0_13, %c0_14] : memref<1x4x256xf32, #tpu.memory_space<vmem>>, vector<1x4x256xf32>
    tpu.vector_store %arg4[%c0_12, %c0_13, %c0_14], %18 {strides = array<i32>} : memref<1x4x256xf32, #tpu.memory_space<vmem>>, vector<1x4x256xf32>,
    return
  }
  func.func @transform_0(%arg0: i32) -> (i32, i32, i32) {
    %c0_i32 = arith.constant 0 : i32
    %c0_i32_0 = arith.constant 0 : i32
    %c0_i32_1 = arith.constant 0 : i32
    return %arg0, %c0_i32, %c0_i32_0 : i32, i32, i32
  }
  func.func @transform_1(%arg0: i32) -> (i32, i32) {
    %c0_i32 = arith.constant 0 : i32
    %c0_i32_0 = arith.constant 0 : i32
    %c0_i32_1 = arith.constant 0 : i32
    return %c0_i32, %c0_i32_0 : i32, i32
  }
  func.func @transform_2(%arg0: i32) -> (i32, i32) {
    %c0_i32 = arith.constant 0 : i32
    %c0_i32_0 = arith.constant 0 : i32
    %c0_i32_1 = arith.constant 0 : i32
    return %c0_i32, %c0_i32_0 : i32, i32
  }
  func.func @transform_3(%arg0: i32) -> (i32, i32, i32) {
    %c0_i32 = arith.constant 0 : i32
    %c0_i32_0 = arith.constant 0 : i32
    %c0_i32_1 = arith.constant 0 : i32
    return %arg0, %c0_i32, %c0_i32_0 : i32, i32, i32
  }
}

</mosaic_0001>

<bundles_post_ra>
// kernel: tpu_custom_call.1
= control target key start
LH: loop header
LB: loop body
LE: loop exit
PB: predicated region body
PF: predicated region fallthrough
CT: control target
= control target key end

     0   :  { %8 = vsyncpa [#allocation3], 0  ;;  %s760_s0 = inlined_call_operand.hbm [shape: f32[2,4,256], index: 0, kind: input, shape index: {}, may-alias: {0,3}]   ;;  %s761_s1 = inlined_call_operand.vmem [shape: f32[4,4], index: 1, kind: input, shape index: {}]   ;;  %s762_s2 = inlined_call_operand.vmem [shape: f32[1,4], index: 2, kind: input, shape index: {}]   ;;  %s763_s3 = inlined_call_operand.hbm [shape: f32[2,4,256], index: 3, kind: output, shape index: {}, may-alias: {0,3}]  }
   0x1   :  { %10 = vsyncpa [#allocation3 + $0x1], 0 }
   0x2   :  { %11 = vsyncpa [#allocation4], 0 }
   0x3   :  { %13 = vsyncpa [#allocation4 + $0x1], 0  ;;  %s589_s12 = smov 0   ;;  %s591_s13 = smov 0  }
   0x4   :  { %s593_s14 = smov 0   ;;  %s595_s15 = smov 0  }
   0x5 LB: > { %s610_s16 = sadd.s32 4294967295, %s562_s15   ;;  %s391_s17 = sadd.s32 4294967294, %s562_s15   ;;  %s562_s15 = sphi %s595_s15, %s778_s15   ;;  %s558_s14 = sphi %s593_s14, %s777_s14   ;;  %s554_s13 = sphi %s591_s13, %s776_s13   ;;  %s550_s12 = sphi %s589_s12, %s775_s12  }
   0x6   : > { %s614_s18 = sadd.s32 1, %s562_s15   ;;  %s26_s19 = sadd.s32 1, %s558_s14 }
   0x7   : > { %s23_s20 = ssub.s32 %s562_s15, %s614_s18  ;;  %p33_p0 = scmp.ne.s32.totalorder %s558_s14, %s554_s13 }
   0x8   : > { %p24_p1 = scmp.eq.s32.totalorder %s23_s20, 0  ;;  %p34_p2 = scmp.eq.s32.totalorder %s562_s15, 0 }
   0x9   : > { %p39_p3 = scmp.ne.s32.totalorder %s554_s13, %s550_s12  ;;  %p40_p4 = scmp.eq.s32.totalorder %s610_s16, 0 }
   0xa   : > { %s626_s21 = scalar_select %p24_p1, %s558_s14, %s26_s19  }
   0xb   : > { %p628_p5 = por %p34_p2, %p33_p0  ;;  %p632_p6 = por %p40_p4, %p39_p3 }
   0xc   : > { %p105_p7 = scmp.eq.s32.totalorder %s610_s16, 1  ;;  %p111_p8 = scmp.eq.s32.totalorder %s391_s17, 1 }
   0xd   : > { %p428_p10 = scmp.lt.s32.totalorder %s562_s15, 2  ;;  %s137_s26 = sand.u32 1, %s558_s14  }
   0xe   : > { %p639_p11 = por %p105_p7, %p33_p0  ;;  %p643_p12 = por %p111_p8, %p39_p3 }
   0xf   : > { %s407_s27 = sshll.u32 %s562_s15, 7  ;;  %s394_s28 = sshll.u32 %s137_s26, 3 }
  0x10   : > { %s767_s24 = scalar_select %p639_p11, 1, 0 }
  0x11   : > { %s768_s25 = scalar_select %p643_p12, 1, 0 }
  0x12   : > { %s652_s4 = scalar_lea.hbm %s760_s0, %s407_s27  ;;  %s141_s5 = scalar_lea.vmem [#allocation2], %s394_s28 }
  0x13   : > { %s149_s6 = sshll.u32 %s141_s5, 4  ;;  %p656_p13 = pnand %p428_p10, %p628_p5  ;;  %s660_s6 = int_to_ptr.vmem [resolvable:$true] %s149_s6 }
  0x14   : > { %s138_s8 = scalar_lea.sflag [#allocation3], %s137_s26  ;;  %s466_s9 = scalar_lea.hbm %s652_s4, 128 }
  0x15   : > { %p467_p2 = scmp.ne.s32.totalorder %s652_s4, %s466_s9  ;;  %p468_p3 = pneg %p656_p13 }
  0x16   : > { %s471_s17 = scalar_lea.hbm %s760_s0, 256  ;;  %p472_p5 = scmp.lt.u32.totalorder %s652_s4, %s760_s0 }
  0x17   : > { %p469_p4 = pnand %p468_p3, %p467_p2  ;;  %p473_p8 = scmp.lt.u32.totalorder %s471_s17, %s466_s9 }
  0x18   : > { %p475_p9 = scmp.lt.u32.totalorder %s466_s9, %s652_s4 }
  0x19   : > { %p470_p7 = pneg %p469_p4  ;;  %p474_p10 = por %p473_p8, %p472_p5 }
  0x1b   : > { %p476_p0 = por %p475_p9, %p474_p10 }
  0x1d   : > { %p477_p1 = pnand %p476_p0, %p470_p7 }
  0x1f   : > { %480 = shalt.err (!%p477_p1)
}
  0x20   : > { %s481_s22 = scalar_lea.vmem %s660_s6, 128  ;;  %s564_s26 = smov [#allocation2]  }
  0x21   : > { %p482_p2 = scmp.ne.s32.totalorder %s660_s6, %s481_s22  ;;  %s486_s27 = sshll.u32 %s564_s26, 4  ;;  %s487_s27 = int_to_ptr.vmem [resolvable:$false] %s486_s27 }
  0x22   : > { %s488_s28 = scalar_lea.vmem %s487_s27, 256  ;;  %p489_p11 = scmp.lt.s32.totalorder %s660_s6, %s487_s27 }
  0x23   : > { %p484_p4 = pnand %p482_p2, %p468_p3  ;;  %p490_p5 = scmp.lt.s32.totalorder %s488_s28, %s481_s22 }
  0x25   : > { %p485_p12 = pneg %p484_p4  ;;  %p491_p8 = por %p490_p5, %p489_p11 }
  0x27   : > { %p492_p9 = pnand %p491_p8, %p485_p12 }
  0x29   : > { %495 = shalt.err (!%p492_p9)
}
  0x2a   : > { %423 = dma.hbm_to_vmem [thread:$0]  (!%p656_p13), %s652_s4, 128, %s660_s6, %s138_s8  }
  0x2b   : > { %p770_p0 = scmp.lt.s32.totalorder %s562_s15, 3  ;;  %p771_p1 = scmp.ge.s32.totalorder %s562_s15, 1 }
  0x2d   : > { %p155_p3 = pnand %p771_p1, %p770_p0 }
  0x2e   : > { %s694_s29 = sand.u32 (!%p155_p3), 1, %s554_s13  }
  0x2f   : > { %158 = sbr.rel (%p155_p3) target bundleno = 564 (0x234), region = 32  ;;  %s398_s30 = sshll.u32 (!%p155_p3), %s694_s29, 3 }
  0x30   : > { %s161_s5 = scalar_lea.sflag (!%p155_p3), [#allocation3], %s694_s29  ;;  %s164_s7 = scalar_lea.vmem (!%p155_p3), [#allocation2], %s398_s30 }
  0x36   : > { %541 = dma.done.wait (%p632_p6), %s161_s5, 128  }
  0x37   : > { %543 = vsyncadd (%p632_p6), %s161_s5, 4294967168  ;;  %vm191_vm0 = vcmask 1043456   ;;  %v187_v0 = vld [vmem:[%s164_s7] sm:$0xff]  ;;  %v565_v5 = vmov 0.0   ;;  %vm566_vm1 = vmmov 0   ;;  %v201_v7 = vlaneseq  ;;  %s408_s9 = sshll.u32 %s610_s16, 7 }
  0x38   : > { %v189_v1 = vcombine.high %v187_v0, %v187_v0  ;;  %v192_v2 = vsel %vm191_vm0, %v187_v0, 0.0  ;;  %411 = vmatprep.subr.mxu0 %v565_v5  ;;  %v198_v6 = vld [vmem:[%s761_s1] sm:$0xf]  ;;  %413 = vmatprep.mubr.msk.f32.mxu0 %vm566_vm1, %v565_v5  ;;  %vm207_vm2 = vcmask 31744   ;;  %v567_v24 = vmov 839922192   ;;  %s716_s20 = scalar_lea.hbm %s763_s3, %s408_s9 }
  0x39   : > { %412 = vmatpush3.msk.msra.mxu0 %vm191_vm0, %v198_v6  ;;  %v202_v8 = vand.u32 127, %v201_v7  ;;  %v204_v9 = vshrl.u32 %v201_v7, 7  ;;  %v199_v14 = vld [vmem:[%s762_s2] sm:$0x1]  ;;  %v297_v25 = vunpack.c.l.s4 %v567_v24  ;;  %s186_s10 = scalar_lea.vmem [#allocation5], %s398_s30  ;;  %s307_s22 = scalar_lea.sflag [#allocation4], %s694_s29 }
  0x3a   : > { %v193_v3 = vsel %vm191_vm0, %v189_v1, 0.0  ;;  %s321_s11 = sshll.u32 %s186_s10, 4  ;;  %p772_p11 = scmp.ne.s32.totalorder %s767_s24, 0  ;;  %s718_s11 = int_to_ptr.vmem [resolvable:$true] %s321_s11 }
  0x3b   : > { %v194_v4 = vadd.f32 %v193_v3, %v192_v2  ;;  %v205_v10 = vsub.s32 %v202_v8, %v204_v9  ;;  %v290_v21 = vsub.s32 0, %v204_v9  ;;  %v298_v26 = vunpack.c.0.s8 %v297_v25  ;;  %s496_s26 = scalar_lea.vmem %s718_s11, 128  ;;  %s568_s16 = smov [#allocation5]  }
  0x3c   : > { %p497_p6 = scmp.ne.s32.totalorder %s718_s11, %s496_s26  ;;  %s500_s27 = sshll.u32 %s568_s16, 4  ;;  %s501_s27 = int_to_ptr.vmem [resolvable:$false] %s500_s27 }
  0x3d   : > { %195 = vadd.xlane.f32.xlu0 %v194_v4  ;;  %v301_v27 = vsub.s32 %v298_v26, %v204_v9  ;;  %s502_s28 = scalar_lea.vmem %s501_s27, 256  ;;  %p503_p7 = scmp.lt.s32.totalorder %s718_s11, %s501_s27 }
  0x3e   : > { %p498_p12 = pnand %p497_p6, %p772_p11  ;;  %p504_p10 = scmp.lt.s32.totalorder %s502_s28, %s496_s26 }
  0x40   : > { %p499_p13 = pneg %p498_p12  ;;  %p505_p2 = por %p504_p10, %p503_p7 }
  0x42   : > { %p506_p4 = pnand %p505_p2, %p499_p13 }
  0xca   : > { %v196_v11 = vpop.xlane.xlu0 %195 }
  0xcb   : > { %v197_v12 = vmul.f32 0.00390625, %v196_v11 }
  0xcd   : > { %v206_v13 = vrot.slane %v197_v12, %v205_v10 }
  0xcf   : > { %414 = vmatmul.mubr.msk.f32.vlgmr.msra.gmra.mrb[0].mxu0 %vm207_vm2, %v206_v13 }
 0x1a2   : > { %v279_v15 = vpop.f32.mrb[0].mxu0 }
 0x1a3   : > { %v280_v16 = vadd.f32 %v279_v15, %v199_v14  ;;  %v415_v17 = vpop.f32.mrb[1].mxu0 }
 0x1a5   : > { %v283_v18 = vadd.f32 3.0, %v280_v16 }
 0x1a7   : > { %v284_v19 = vmax.f32 %v283_v18, 0.0 }
 0x1a9   : > { %v285_v20 = vmin.f32 %v284_v19, 6.0 }
 0x1ab   : > { %v287_v22 = vmul.f32 0.16666667, %v285_v20 }
 0x1ad   : > { %v291_v23 = vrot.slane %v287_v22, %v290_v21 }
 0x1af   : > { %293 = vbcast.lane.b32.xlu0 %v291_v23, 256 }
 0x221   : > { %v294_v28 = vpop.permute.xlu0 %293 }
 0x222   : > { %v302_v29 = vrot.slane %v294_v28, %v301_v27 }
 0x224   : > { %v304_v30 = vmul.f32 %v302_v29, %v187_v0 }
 0x226   : > { %305 = vst [vmem:[%s186_s10] sm:$0xff] %v304_v30 }
 0x227   : > { %509 = shalt.err (!%p506_p4)
}
 0x228   : > { %s510_s29 = scalar_lea.hbm %s716_s20, 128  ;;  %s514_s7 = scalar_lea.hbm %s763_s3, 256 }
 0x229   : > { %p511_p5 = scmp.ne.s32.totalorder %s716_s20, %s510_s29  ;;  %p515_p0 = scmp.lt.u32.totalorder %s716_s20, %s763_s3 }
 0x22a   : > { %p516_p1 = scmp.lt.u32.totalorder %s514_s7, %s510_s29  ;;  %p518_p6 = scmp.lt.u32.totalorder %s510_s29, %s716_s20 }
 0x22b   : > { %p512_p8 = pnand %p511_p5, %p772_p11 }
 0x22c   : > { %p517_p3 = por %p516_p1, %p515_p0 }
 0x22d   : > { %p513_p9 = pneg %p512_p8 }
 0x22e   : > { %p519_p12 = por %p518_p6, %p517_p3 }
 0x230   : > { %p520_p13 = pnand %p519_p12, %p513_p9 }
 0x232   : > { %523 = shalt.err (!%p520_p13)
}
 0x233   : > { %418 = dma.vmem_to_hbm [thread:$0]  (%p772_p11), %s718_s11, 128, %s716_s20, %s307_s22  }
 0x234 PF: > { %s333_s23 = sand.u32 1, %s550_s12   ;;  %p773_p7 = scmp.ne.s32.totalorder %s768_s25, 0 }
 0x235   : > { %p774_p10 = scmp.ge.s32.totalorder %s562_s15, 2  ;;  %s334_s8 = scalar_lea.sflag [#allocation4], %s333_s23 }
 0x237   : > { %p425_p2 = pnand %p774_p10, %p773_p7 }
 0x239   : > { %545 = dma.done.wait (!%p425_p2), %s334_s8, 128  }
 0x23a   : > { %547 = vsyncadd (!%p425_p2), %s334_s8, 4294967168  ;;  %p16_p4 = scmp.ge.s32.totalorder %s614_s18, 4   ;;  %s775_s12 = smov %s554_s13 }
 0x23b   : > { %s776_s13 = smov %s558_s14  ;;  %s777_s14 = smov %s626_s21 }
 0x23c   : > { %s778_s15 = smov %s614_s18  ;;  %18 = sbr.rel (!%p16_p4) target bundleno = 5 (0x5), region = 77 }
 0x243   :  { %339 = vsyncpa [#allocation3], 1 }
 0x244   :  { %341 = vsyncpa [#allocation3 + $0x1], 1 }
 0x245   :  { %342 = vsyncpa [#allocation4], 1 }
 0x246   :  { %344 = vsyncpa [#allocation4 + $0x1], 1 }

</bundles_post_ra>
